<compile_context>
chip_gen: v7x
topology: tpu7x:2x2x1
jax: 0.10.0
libtpu: 0.0.40
codegen_flags: <defaults>
</compile_context>

<pallas_src>
import jax
import jax.numpy as jnp
from jax.experimental import pallas as pl
from jax.experimental.pallas import tpu as pltpu

LANES = 128
MAX_TILE_ROWS = 2048  # (2048, 128) f32 block = 1 MiB; 2 inputs x 2 bufs = 4 MiB


def _ssd_kernel(t_ref, a_ref, o_ref, acc_ref):
    """Squared-sum-of-differences over a row-sharded slab.

    Grid: (shards, steps). For each shard (parallel axis) the steps axis is a
    reduction; acc_ref is a VMEM-resident element-wise accumulator that is
    collapsed to a scalar only at the last step.
    """
    step = pl.program_id(1)

    @pl.when(step == 0)
    def _():
        acc_ref[...] = jnp.zeros_like(acc_ref)

    d = t_ref[...] - a_ref[...]
    acc_ref[...] += d * d  # pure VPU work in the hot loop

    @pl.when(step == pl.num_programs(1) - 1)
    def _():
        # Single XLU reduction per shard, only on the final step.
        o_ref[...] = jnp.sum(acc_ref[...], keepdims=True)


def _flatten_concat(arrs):
    return jnp.concatenate(
        [jnp.asarray(x, dtype=jnp.float32).reshape(-1) for x in arrs]
    )


def alpha_arch_loss(alphaDAG, target_alphaDAG):
    """Pallas implementation of AlphaArchLoss.forward."""
    assert len(alphaDAG) == len(target_alphaDAG)
    for a, t in zip(alphaDAG, target_alphaDAG):
        # Required so the single post-concat padding keeps both flattened
        # vectors element-aligned.
        assert tuple(a.shape) == tuple(t.shape), (a.shape, t.shape)

    a_flat = _flatten_concat(alphaDAG)
    t_flat = _flatten_concat(target_alphaDAG)
    total = a_flat.shape[0]

    # ---- choose slab geometry (all static Python ints) ----
    rows_min = pl.cdiv(total, LANES)
    rows8 = ((rows_min + 7) // 8) * 8  # sublane multiple

    if rows8 >= 2 * MAX_TILE_ROWS:
        shards = 2                      # use both TensorCores on v7x
        tile_rows = MAX_TILE_ROWS
    else:
        shards = 1
        tile_rows = min(MAX_TILE_ROWS, rows8)

    chunk = shards * tile_rows
    rows = ((rows8 + chunk - 1) // chunk) * chunk
    steps = rows // chunk               # reduction steps per shard

    pad = rows * LANES - total
    a_slab = jnp.pad(a_flat, (0, pad)).reshape(rows, LANES)
    t_slab = jnp.pad(t_flat, (0, pad)).reshape(rows, LANES)

    def row_block(p, i, _steps=steps):
        return (p * _steps + i, 0)

    partials = pl.pallas_call(
        _ssd_kernel,
        out_shape=jax.ShapeDtypeStruct((shards, 1), jnp.float32),
        grid_spec=pltpu.PrefetchScalarGridSpec(
            num_scalar_prefetch=0,
            grid=(shards, steps),
            in_specs=[
                pl.BlockSpec((tile_rows, LANES), row_block),
                pl.BlockSpec((tile_rows, LANES), row_block),
            ],
            out_specs=pl.BlockSpec((1, 1), lambda p, i: (p, 0)),
            scratch_shapes=[pltpu.VMEM((tile_rows, LANES), jnp.float32)],
        ),
        compiler_params=pltpu.CompilerParams(
            dimension_semantics=("parallel", "arbitrary"),
        ),
    )(t_slab, a_slab)

    return jnp.sum(partials)


def _ref_loss(alphaDAG, target_alphaDAG):
    ref = jnp.float32(0.0)
    for a, t in zip(alphaDAG, target_alphaDAG):
        ref = ref + jnp.sum((jnp.asarray(t, jnp.float32)
                             - jnp.asarray(a, jnp.float32)) ** 2)
    return ref


if __name__ == "__main__":
    key = jax.random.PRNGKey(0)

    # --- Test 1: realistic DARTS-style tiny alpha DAG -----------------------
    shapes = [(2, 8), (3, 8), (4, 8), (5, 8)]
    keys = jax.random.split(key, 2 * len(shapes) + 2)

    alphaDAG = [
        jax.random.normal(keys[2 * i], s, dtype=jnp.float32)
        for i, s in enumerate(shapes)
    ]
    target_alphaDAG = [
        jax.random.normal(keys[2 * i + 1], s, dtype=jnp.float32)
        for i, s in enumerate(shapes)
    ]

    loss_small = jax.block_until_ready(alpha_arch_loss(alphaDAG, target_alphaDAG))
    ref_small = _ref_loss(alphaDAG, target_alphaDAG)
    assert jnp.allclose(loss_small, ref_small, rtol=1e-5, atol=1e-5), (
        loss_small, ref_small)

    # --- Test 2: larger slab to exercise multi-step + 2-shard path ----------
    big_shape = (8192, 128)  # -> 8192 rows: 2 shards x 2 reduction steps
    big_a = [jax.random.normal(keys[-2], big_shape, dtype=jnp.float32)]
    big_t = [jax.random.normal(keys[-1], big_shape, dtype=jnp.float32)]

    loss_big = jax.block_until_ready(alpha_arch_loss(big_a, big_t))
    ref_big = _ref_loss(big_a, big_t)
    assert jnp.allclose(loss_big, ref_big, rtol=1e-4, atol=1e-3), (
        loss_big, ref_big)

    print("KERNEL_OK")
</pallas_src>

<mosaic_0001>
module attributes {stable_mosaic.version = 11 : i64} {
  func.func @_ssd_kernel(%arg0: i32, %arg1: i32, %arg2: memref<8x128xf32, #tpu.memory_space<vmem>>, %arg3: memref<8x128xf32, #tpu.memory_space<vmem>>, %arg4: memref<1x1xf32, #tpu.memory_space<vmem>>, %arg5: memref<8x128xf32, #tpu.memory_space<vmem>>) attributes {dimension_semantics = [#tpu.dimension_semantics<parallel>, #tpu.dimension_semantics<arbitrary>], iteration_bounds = array<i64: 1, 1>, scalar_prefetch = 0 : i64, scratch_operands = 1 : i64, tpu.core_type = #tpu.core_type<tc>, window_params = [{transform_indices = @transform_0, window_bounds = array<i64: 8, 128>}, {transform_indices = @transform_1, window_bounds = array<i64: 8, 128>}, {transform_indices = @transform_2, window_bounds = array<i64: 1, 1>}]} {
    %c0_i32 = arith.constant 0 : i32
    %0 = arith.cmpi eq, %arg1, %c0_i32 : i32
    %1 = arith.extui %0 : i1 to i32
    %c0_i32_0 = arith.constant 0 : i32
    %2 = arith.cmpi ne, %1, %c0_i32_0 : i32
    scf.if %2 {
      %cst = arith.constant 0.000000e+00 : f32
      %13 = vector.broadcast %cst : f32 to vector<8x128xf32>
      %c0_10 = arith.constant 0 : index
      %c0_11 = arith.constant 0 : index
      %14 = vector.load %arg5[%c0_10, %c0_11] : memref<8x128xf32, #tpu.memory_space<vmem>>, vector<8x128xf32>
      tpu.vector_store %arg5[%c0_10, %c0_11], %13 {strides = array<i32>} : memref<8x128xf32, #tpu.memory_space<vmem>>, vector<8x128xf32>,
    } else {
    }
    %c0 = arith.constant 0 : index
    %c0_1 = arith.constant 0 : index
    %3 = vector.load %arg2[%c0, %c0_1] : memref<8x128xf32, #tpu.memory_space<vmem>>, vector<8x128xf32>
    %c0_2 = arith.constant 0 : index
    %c0_3 = arith.constant 0 : index
    %4 = vector.load %arg3[%c0_2, %c0_3] : memref<8x128xf32, #tpu.memory_space<vmem>>, vector<8x128xf32>
    %5 = arith.subf %3, %4 : vector<8x128xf32>
    %c0_4 = arith.constant 0 : index
    %c0_5 = arith.constant 0 : index
    %6 = vector.load %arg5[%c0_4, %c0_5] : memref<8x128xf32, #tpu.memory_space<vmem>>, vector<8x128xf32>
    %7 = arith.mulf %5, %5 : vector<8x128xf32>
    %8 = arith.addf %6, %7 : vector<8x128xf32>
    %c0_6 = arith.constant 0 : index
    %c0_7 = arith.constant 0 : index
    %9 = vector.load %arg5[%c0_6, %c0_7] : memref<8x128xf32, #tpu.memory_space<vmem>>, vector<8x128xf32>
    tpu.vector_store %arg5[%c0_6, %c0_7], %8 {strides = array<i32>} : memref<8x128xf32, #tpu.memory_space<vmem>>, vector<8x128xf32>,
    %c0_i32_8 = arith.constant 0 : i32
    %10 = arith.cmpi eq, %arg1, %c0_i32_8 : i32
    %11 = arith.extui %10 : i1 to i32
    %c0_i32_9 = arith.constant 0 : i32
    %12 = arith.cmpi ne, %11, %c0_i32_9 : i32
    scf.if %12 {
      %c0_10 = arith.constant 0 : index
      %c0_11 = arith.constant 0 : index
      %13 = vector.load %arg5[%c0_10, %c0_11] : memref<8x128xf32, #tpu.memory_space<vmem>>, vector<8x128xf32>
      %14 = vector.shape_cast %13 : vector<8x128xf32> to vector<1x8x128xf32>
      %cst = arith.constant dense<0.000000e+00> : vector<1xf32>
      %15 = vector.multi_reduction <add>, %14, %cst [1, 2] : vector<1x8x128xf32> to vector<1xf32>
      %16 = vector.shape_cast %15 : vector<1xf32> to vector<1x1x1xf32>
      %17 = vector.extract %16[0, 0, 0] : f32 from vector<1x1x1xf32>
      %18 = vector.broadcast %17 : f32 to vector<1x1xf32>
      %c0_12 = arith.constant 0 : index
      %c0_13 = arith.constant 0 : index
      %19 = vector.load %arg4[%c0_12, %c0_13] : memref<1x1xf32, #tpu.memory_space<vmem>>, vector<1x1xf32>
      tpu.vector_store %arg4[%c0_12, %c0_13], %18 {strides = array<i32>} : memref<1x1xf32, #tpu.memory_space<vmem>>, vector<1x1xf32>,
    } else {
    }
    return
  }
  func.func @transform_0(%arg0: i32, %arg1: i32) -> (i32, i32) {
    %c1_i32 = arith.constant 1 : i32
    %0 = arith.muli %arg0, %c1_i32 : i32
    %1 = arith.addi %0, %arg1 : i32
    %c0_i32 = arith.constant 0 : i32
    %c0_i32_0 = arith.constant 0 : i32
    return %1, %c0_i32 : i32, i32
  }
  func.func @transform_1(%arg0: i32, %arg1: i32) -> (i32, i32) {
    %c1_i32 = arith.constant 1 : i32
    %0 = arith.muli %arg0, %c1_i32 : i32
    %1 = arith.addi %0, %arg1 : i32
    %c0_i32 = arith.constant 0 : i32
    %c0_i32_0 = arith.constant 0 : i32
    return %1, %c0_i32 : i32, i32
  }
  func.func @transform_2(%arg0: i32, %arg1: i32) -> (i32, i32) {
    %c0_i32 = arith.constant 0 : i32
    %c0_i32_0 = arith.constant 0 : i32
    return %arg0, %c0_i32 : i32, i32
  }
}

</mosaic_0001>

<bundles_post_ra>
// kernel: tpu_custom_call.1
= control target key start
LH: loop header
LB: loop body
LE: loop exit
PB: predicated region body
PF: predicated region fallthrough
CT: control target
= control target key end

     0   :  { %7 = vsyncpa [#allocation4], 0  ;;  %s219_s0 = inlined_call_operand.hbm [shape: f32[8,128], index: 0, kind: input, shape index: {}]   ;;  %s220_s1 = inlined_call_operand.hbm [shape: f32[8,128], index: 1, kind: input, shape index: {}]   ;;  %s221_s2 = inlined_call_operand.hbm [shape: f32[1,1], index: 2, kind: output, shape index: {}]  }
   0x1   :  { %8 = vsyncpa [#allocation7], 0 }
   0x2   :  { %9 = vsyncpa [#allocation5], 0  ;;  %s165_s9 = smov [#allocation3]   ;;  %s166_s11 = smov [#allocation6]  }
   0x3   :  { %s19_s10 = sshll.u32 %s165_s9, 4  ;;  %s32_s12 = sshll.u32 %s166_s11, 4  ;;  %s20_s10 = int_to_ptr.vmem [resolvable:$true] %s19_s10  ;;  %s33_s12 = int_to_ptr.vmem [resolvable:$true] %s32_s12 }
   0x4   :  { %s93_s15 = scalar_lea.hbm %s219_s0, 128 }
   0x5   :  { %p94_p0 = scmp.ne.s32.totalorder %s219_s0, %s93_s15  ;;  %p97_p1 = scmp.lt.u32.totalorder %s93_s15, %s219_s0 }
   0x7   :  { %p99_p2 = pnand %p97_p1, %p94_p0 }
   0x9   :  { %102 = shalt.err (!%p99_p2)
}
   0xa   :  { %s103_s20 = scalar_lea.vmem %s20_s10, 128  ;;  %p108_p4 = scmp.lt.s32.totalorder %s20_s10, %s20_s10 }
   0xb   :  { %p104_p3 = scmp.ne.s32.totalorder %s20_s10, %s103_s20  ;;  %p109_p5 = scmp.lt.s32.totalorder %s103_s20, %s103_s20 }
   0xd   :  { %p110_p6 = por %p109_p5, %p108_p4 }
   0xf   :  { %p111_p7 = pnand %p110_p6, %p104_p3 }
  0x11   :  { %114 = shalt.err (!%p111_p7)
}
  0x12   :  { %22 = dma.hbm_to_vmem [thread:$0]  %s219_s0, 128, %s20_s10, [#allocation4]  }
  0x13   :  { %s115_s25 = scalar_lea.hbm %s220_s1, 128 }
  0x14   :  { %p116_p8 = scmp.ne.s32.totalorder %s220_s1, %s115_s25  ;;  %p119_p9 = scmp.lt.u32.totalorder %s115_s25, %s220_s1 }
  0x16   :  { %p121_p10 = pnand %p119_p9, %p116_p8 }
  0x18   :  { %124 = shalt.err (!%p121_p10)
}
  0x19   :  { %s125_s30 = scalar_lea.vmem %s33_s12, 128  ;;  %p130_p12 = scmp.lt.s32.totalorder %s33_s12, %s33_s12 }
  0x1a   :  { %p126_p11 = scmp.ne.s32.totalorder %s33_s12, %s125_s30  ;;  %p131_p13 = scmp.lt.s32.totalorder %s125_s30, %s125_s30 }
  0x1c   :  { %p132_p0 = por %p131_p13, %p130_p12 }
  0x1e   :  { %p133_p1 = pnand %p132_p0, %p126_p11 }
  0x20   :  { %136 = shalt.err (!%p133_p1)
}
  0x21   :  { %35 = dma.hbm_to_vmem [thread:$0]  %s220_s1, 128, %s33_s12, [#allocation7]  }
  0x22   :  { %159 = dma.done.wait [#allocation4], 128  }
  0x23   :  { %160 = vsyncadd [#allocation4], 4294967168 }
  0x24   :  { %161 = dma.done.wait [#allocation7], 128  }
  0x25   :  { %162 = vsyncadd [#allocation7], 4294967168  ;;  %v49_v0 = vld [vmem:[#allocation3] sm:$0xff]  ;;  %v50_v1 = vld [vmem:[#allocation6] sm:$0xff]  ;;  %s167_s4 = smov [#allocation8]   ;;  %vm70_vm0 = vcmask 0  }
  0x26   :  { %v51_v2 = vsub.f32 %v49_v0, %v50_v1  ;;  %s78_s5 = sshll.u32 %s167_s4, 4  ;;  %s79_s5 = int_to_ptr.vmem [resolvable:$true] %s78_s5 }
  0x27   :  { %s137_s6 = scalar_lea.vmem %s79_s5, 16  ;;  %s141_s7 = scalar_lea.vmem %s79_s5, 32 }
  0x28   :  { %v53_v3 = vmul.f32 %v51_v2, %v51_v2  ;;  %p138_p2 = scmp.ne.s32.totalorder %s79_s5, %s137_s6  ;;  %p142_p3 = scmp.lt.s32.totalorder %s79_s5, %s79_s5 }
  0x29   :  { %p143_p4 = scmp.lt.s32.totalorder %s141_s7, %s137_s6 }
  0x2a   :  { %60 = vadd.xlane.f32.xlu0 %v53_v3 }
  0x2b   :  { %p144_p5 = por %p143_p4, %p142_p3 }
  0x2d   :  { %p145_p6 = pnand %p144_p5, %p138_p2 }
  0xb7   :  { %v61_v4 = vpop.xlane.xlu0 %60 }
  0xb8   :  { %v62_v5 = vrot.slane %v61_v4, 4 }
  0xba   :  { %v63_v6 = vadd.f32 %v62_v5, %v61_v4 }
  0xbc   :  { %v64_v7 = vrot.slane %v63_v6, 2 }
  0xbe   :  { %v65_v8 = vadd.f32 %v64_v7, %v63_v6 }
  0xc0   :  { %v66_v9 = vrot.slane %v65_v8, 1 }
  0xc2   :  { %v67_v10 = vadd.f32 %v66_v9, %v65_v8 }
  0xc4   :  { %88 = vpush %v67_v10 }
  0xf5   :  { %s89_s1 = spop %88 }
  0xf6   :  { %v69_v11 = vstv %s89_s1 }
  0xf7   :  { %71 = vst.msk [vmem:[#allocation8] sm:$0x1] %vm70_vm0, %v69_v11 }
  0xf8   :  { %148 = shalt.err (!%p145_p6)
}
  0xf9   :  { %s149_s10 = scalar_lea.hbm %s221_s2, 16 }
  0xfa   :  { %p150_p7 = scmp.ne.s32.totalorder %s221_s2, %s149_s10  ;;  %p153_p8 = scmp.lt.u32.totalorder %s149_s10, %s221_s2 }
  0xfc   :  { %p155_p9 = pnand %p153_p8, %p150_p7 }
  0xfe   :  { %158 = shalt.err (!%p155_p9)
}
  0xff   :  { %81 = dma.vmem_to_hbm [thread:$0]  %s79_s5, 16, %s221_s2, [#allocation5]  }
 0x100   :  { %163 = dma.done.wait [#allocation5], 16  }
 0x101   :  { %164 = vsyncadd [#allocation5], 4294967280 }
 0x102   :  { %85 = vsyncpa [#allocation4], 1 }
 0x103   :  { %86 = vsyncpa [#allocation7], 1 }
 0x104   :  { %87 = vsyncpa [#allocation5], 1 }

</bundles_post_ra>
